<compile_context>
chip_gen: v7x
topology: tpu7x:2x2x1
jax: 0.10.0
libtpu: 0.0.40
codegen_flags: <defaults>
</compile_context>

<pallas_src>
import functools

import jax
import jax.numpy as jnp
from jax.experimental import pallas as pl
from jax.experimental.pallas import tpu as pltpu

GAMMA = 2.0
IGNORE_INDEX = 20
PAD_TOKEN = 20  # unused in forward (only ignore_index matters), kept for parity


def _round_up(x, m):
    return (x + m - 1) // m * m


def _focal_partials_kernel(logits_ref, tgt_ref, out_ref, *, tm, vocab, n_total,
                           exclude_val):
    i = pl.program_id(0)

    x = logits_ref[...].astype(jnp.float32)                # (tm, V)
    t_row = tgt_ref[0]                                     # (1, tm) int32, lane-dense

    # Row validity (the last row tile may overhang N): zero garbage rows so neither
    # the logsumexp nor the MXU gather ever multiplies/filters NaN or Inf padding.
    row_ids = i * tm + jax.lax.broadcasted_iota(jnp.int32, (tm, 1), 0)
    row_valid = row_ids < n_total                          # (tm, 1) bool
    x = jnp.where(row_valid, x, 0.0)

    # Per-row shifted logsumexp; the row max cancels against the shifted target
    # logit in the summed CE, so it is never added back.
    row_max = jnp.max(x, axis=-1, keepdims=True)           # (tm, 1)
    x_shift = x - row_max                                  # (tm, V), <= 0
    lse_shift = jnp.log(jnp.sum(jnp.exp(x_shift), axis=-1, keepdims=True))
    lse_sum = jnp.sum(jnp.where(row_valid, lse_shift, 0.0))

    # Target-logit gather without any lane<->sublane relayout:
    #   sum_r x_shift[r, t_r] = trace( onehot_T(V,tm) @ x_shift(tm,V) )
    # onehot_T is built directly from the lane-dense targets with an iota compare.
    vocab_iota = jax.lax.broadcasted_iota(jnp.int32, (vocab, tm), 0)
    onehot_t = jnp.where(vocab_iota == t_row, 1.0, 0.0).astype(jnp.bfloat16)

    # f32-accurate gather via a 3-way bf16 split (MXU quantizes inputs to bf16;
    # the splits recover full f32 mantissa, accumulation is already f32).
    hi = x_shift.astype(jnp.bfloat16)
    r1 = x_shift - hi.astype(jnp.float32)
    mid = r1.astype(jnp.bfloat16)
    lo = (r1 - mid.astype(jnp.float32)).astype(jnp.bfloat16)
    g = (jnp.dot(onehot_t, hi, preferred_element_type=jnp.float32)
         + jnp.dot(onehot_t, mid, preferred_element_type=jnp.float32)
         + jnp.dot(onehot_t, lo, preferred_element_type=jnp.float32))   # (V, V)
    eye = (jax.lax.broadcasted_iota(jnp.int32, (vocab, vocab), 0)
           == jax.lax.broadcasted_iota(jnp.int32, (vocab, vocab), 1))
    gathered_sum = jnp.sum(jnp.where(eye, g, 0.0))

    ce_sum = lse_sum - gathered_sum

    # Non-ignored row count; rows beyond N were host-padded with `exclude_val`,
    # so they never count.
    cnt = jnp.sum(jnp.where(t_row != exclude_val, 1.0, 0.0))

    # Lane-dense (1, 8, 128) partial tile: sublane 0 carries ce_sum, sublane 1 cnt.
    sub = jax.lax.broadcasted_iota(jnp.int32, out_ref.shape, 1)
    out_ref[...] = jnp.where(sub == 0, ce_sum, cnt).astype(jnp.float32)


def _pick_tile_and_vmem(n_rows, vocab, itemsize):
    """Choose the row tile (multiple of 8) and a matching scoped-VMEM limit."""
    try:
        vmem_cap = int(pltpu.get_tpu_info().vmem_capacity_bytes)
    except Exception:
        vmem_cap = 64 * 1024 * 1024            # conservative (v7x-sized) fallback

    lanes = _round_up(max(vocab, 1), 128)
    # Rough per-row VMEM cost: double-buffered logits, wide f32 temporaries
    # (cast/shift/exp/splits), lane-padded (tm,1) reductions, the transposed
    # bf16 one-hot, and the double-buffered lane-dense targets.
    per_row = (2 * lanes * itemsize            # logits double buffer
               + 6 * lanes * 4                 # wide working-set temporaries
               + 5 * 128 * 4                   # (tm, 1) temporaries (lane padded)
               + 2 * vocab * 2                 # transposed one-hot (bf16)
               + 2 * 8 * 4)                    # lane-dense targets double buffer
    fixed = vocab * vocab * 4 + (2 << 20)      # (V, V) trace temp + slack

    budget = max(int(0.45 * vmem_cap) - fixed, per_row * 8)
    tm_vmem = budget // per_row
    tm_bw = max(8, (4 << 20) // max(vocab * itemsize, 1))   # <= ~4 MiB logits / step

    tm = max(8, min(tm_vmem, tm_bw, 32768))
    if tm >= 256:
        tm = (tm // 128) * 128                 # keep the targets lane dim tidy
    tm = min(tm, _round_up(n_rows, 8))         # don't over-tile small problems
    tm = max(8, (tm // 8) * 8)

    needed = tm * per_row + fixed + (4 << 20)
    vmem_limit = min(int(0.92 * vmem_cap), max(32 << 20, needed))
    return tm, vmem_limit


def focal_loss(inputs, targets, *, gamma=GAMMA, ignore_index=IGNORE_INDEX):
    """inputs: (B, T, V) float logits; targets: (B, T) int class indices."""
    B, T, V = inputs.shape
    N = B * T

    logits_2d = inputs.reshape(N, V)

    itemsize = jnp.dtype(inputs.dtype).itemsize
    tm, vmem_limit = _pick_tile_and_vmem(N, V, itemsize)
    g = -(-N // tm)                                          # cdiv(N, tm)

    # Lane-dense targets: pad to g*tm rows with a value that is never a real
    # (non-ignored) row, then reshape to (g, 1, tm) so each grid step reads one
    # contiguous (1, 1, tm) row-vector (dense HBM layout + dense DMA).
    exclude_val = int(ignore_index) if ignore_index is not None else -1
    tgt_flat = targets.reshape(N).astype(jnp.int32)
    tgt_padded = jnp.full((g * tm,), exclude_val, dtype=jnp.int32).at[:N].set(tgt_flat)
    tgt_3d = tgt_padded.reshape(g, 1, tm)

    kernel = functools.partial(_focal_partials_kernel, tm=tm, vocab=V,
                               n_total=N, exclude_val=exclude_val)

    partials = pl.pallas_call(
        kernel,
        out_shape=jax.ShapeDtypeStruct((g, 8, 128), jnp.float32),
        grid_spec=pltpu.PrefetchScalarGridSpec(
            num_scalar_prefetch=0,
            grid=(g,),
            in_specs=[
                pl.BlockSpec((tm, V), lambda i: (i, 0)),        # logits row tile
                pl.BlockSpec((1, 1, tm), lambda i: (i, 0, 0)),  # lane-dense targets
            ],
            out_specs=pl.BlockSpec((1, 8, 128), lambda i: (i, 0, 0)),
        ),
        compiler_params=pltpu.CompilerParams(
            dimension_semantics=("parallel",),      # megacore-shardable on v7x
            vmem_limit_bytes=vmem_limit),
    )(logits_2d, tgt_3d)

    # Tiny O(grid) / O(1) scalar epilogue (exactly mirrors the PyTorch forward).
    ce_sum = jnp.sum(partials[:, 0, 0])
    cnt = jnp.sum(partials[:, 1, 0])
    ce_mean = ce_sum / jnp.float32(N)               # F.cross_entropy(..., 'mean')
    pt = jnp.exp(-ce_mean)
    om = 1.0 - pt
    focal_factor = om * om if float(gamma) == 2.0 else om ** jnp.float32(gamma)
    # focal.sum() == cnt * focal_factor * ce_mean (masked positions contribute 0)
    return cnt * (focal_factor * ce_mean) / (cnt + 1e-6)


def focal_loss_ref(inputs, targets, *, gamma=GAMMA, ignore_index=IGNORE_INDEX):
    """Pure-JAX reference mirroring the PyTorch forward exactly."""
    B, T, V = inputs.shape
    x = inputs.reshape(-1, V).astype(jnp.float32)
    t = targets.reshape(-1)
    mask = (t != ignore_index) if ignore_index is not None else jnp.ones_like(t, bool)
    logp = jax.nn.log_softmax(x, axis=-1)
    ce_rows = -jnp.take_along_axis(logp, t[:, None], axis=-1)[:, 0]
    ce_mean = ce_rows.mean()                               # scalar (reduction='mean')
    ce_vec = ce_mean * mask.astype(jnp.float32)
    pt = jnp.exp(-ce_vec)
    focal = (1.0 - pt) ** gamma * ce_vec
    return focal.sum() / (mask.sum().astype(jnp.float32) + 1e-6)


if __name__ == "__main__":
    key = jax.random.PRNGKey(0)
    k1, k2 = jax.random.split(key)

    B, T, V = 2, 8, 32
    inputs = jax.random.normal(k1, (B, T, V), dtype=jnp.float32)
    targets = jax.random.randint(k2, (B, T), 0, V, dtype=jnp.int32)
    # force a few pad positions so the ignore_index mask is exercised
    targets = targets.at[0, 0].set(IGNORE_INDEX).at[1, 3].set(IGNORE_INDEX)

    loss = jax.block_until_ready(focal_loss(inputs, targets))
    ref = jax.block_until_ready(focal_loss_ref(inputs, targets))

    assert jnp.allclose(loss, ref, rtol=1e-5, atol=1e-6), (loss, ref)
    print("KERNEL_OK")
</pallas_src>

<mosaic_0001>
module attributes {stable_mosaic.version = 11 : i64} {
  func.func @_focal_partials_kernel(%arg0: i32, %arg1: memref<16x32xf32, #tpu.memory_space<vmem>>, %arg2: memref<1x1x16xi32, #tpu.memory_space<vmem>>, %arg3: memref<1x8x128xf32, #tpu.memory_space<vmem>>) attributes {dimension_semantics = [#tpu.dimension_semantics<parallel>], iteration_bounds = array<i64: 1>, scalar_prefetch = 0 : i64, scratch_operands = 0 : i64, tpu.core_type = #tpu.core_type<tc>, window_params = [{transform_indices = @transform_0, window_bounds = array<i64: 16, 32>}, {transform_indices = @transform_1, window_bounds = array<i64: 1, 1, 16>}, {transform_indices = @transform_2, window_bounds = array<i64: 1, 8, 128>}]} {
    %c0 = arith.constant 0 : index
    %c0_0 = arith.constant 0 : index
    %0 = vector.load %arg1[%c0, %c0_0] : memref<16x32xf32, #tpu.memory_space<vmem>>, vector<16x32xf32>
    %c0_1 = arith.constant 0 : index
    %c0_2 = arith.constant 0 : index
    %c0_3 = arith.constant 0 : index
    %1 = vector.load %arg2[%c0_1, %c0_2, %c0_3] : memref<1x1x16xi32, #tpu.memory_space<vmem>>, vector<1x1x16xi32>
    %2 = vector.shape_cast %1 : vector<1x1x16xi32> to vector<1x16xi32>
    %c16_i32 = arith.constant 16 : i32
    %3 = arith.muli %arg0, %c16_i32 : i32
    %4 = tpu.iota {dimensions = array<i32: 0>} : vector<16x1xi32>
    %5 = vector.broadcast %3 : i32 to vector<16x1xi32>
    %6 = arith.addi %5, %4 : vector<16x1xi32>
    %c16_i32_4 = arith.constant 16 : i32
    %7 = vector.broadcast %c16_i32_4 : i32 to vector<16x1xi32>
    %8 = arith.cmpi slt, %6, %7 : vector<16x1xi32>
    %cst = arith.constant 0.000000e+00 : f32
    %9 = vector.shape_cast %8 : vector<16x1xi1> to vector<16x1xi1>
    %10 = vector.broadcast %9 : vector<16x1xi1> to vector<16x32xi1>
    %11 = vector.broadcast %cst : f32 to vector<16x32xf32>
    %12 = arith.select %10, %0, %11 : vector<16x32xi1>, vector<16x32xf32>
    %cst_5 = arith.constant dense<0xFF800000> : vector<16xf32>
    %13 = vector.multi_reduction <maximumf>, %12, %cst_5 [1] : vector<16x32xf32> to vector<16xf32>
    %14 = vector.shape_cast %13 : vector<16xf32> to vector<16x1xf32>
    %15 = vector.broadcast %14 : vector<16x1xf32> to vector<16x32xf32>
    %16 = arith.subf %12, %15 : vector<16x32xf32>
    %17 = math.exp %16 : vector<16x32xf32>
    %cst_6 = arith.constant dense<0.000000e+00> : vector<16xf32>
    %18 = vector.multi_reduction <add>, %17, %cst_6 [1] : vector<16x32xf32> to vector<16xf32>
    %19 = vector.shape_cast %18 : vector<16xf32> to vector<16x1xf32>
    %20 = math.log %19 : vector<16x1xf32>
    %cst_7 = arith.constant 0.000000e+00 : f32
    %21 = vector.broadcast %cst_7 : f32 to vector<16x1xf32>
    %22 = arith.select %8, %20, %21 : vector<16x1xi1>, vector<16x1xf32>
    %23 = vector.shape_cast %22 : vector<16x1xf32> to vector<1x16x1xf32>
    %cst_8 = arith.constant dense<0.000000e+00> : vector<1xf32>
    %24 = vector.multi_reduction <add>, %23, %cst_8 [1, 2] : vector<1x16x1xf32> to vector<1xf32>
    %25 = vector.shape_cast %24 : vector<1xf32> to vector<1x1x1xf32>
    %26 = vector.extract %25[0, 0, 0] : f32 from vector<1x1x1xf32>
    %27 = tpu.iota {dimensions = array<i32: 0>} : vector<32x16xi32>
    %28 = vector.broadcast %2 : vector<1x16xi32> to vector<32x16xi32>
    %29 = arith.cmpi eq, %27, %28 : vector<32x16xi32>
    %cst_9 = arith.constant 1.000000e+00 : f32
    %cst_10 = arith.constant 0.000000e+00 : f32
    %30 = vector.broadcast %cst_9 : f32 to vector<32x16xf32>
    %31 = vector.broadcast %cst_10 : f32 to vector<32x16xf32>
    %32 = arith.select %29, %30, %31 : vector<32x16xi1>, vector<32x16xf32>
    %33 = arith.truncf %32 : vector<32x16xf32> to vector<32x16xbf16>
    %34 = arith.truncf %16 : vector<16x32xf32> to vector<16x32xbf16>
    %35 = arith.extf %34 : vector<16x32xbf16> to vector<16x32xf32>
    %36 = arith.subf %16, %35 : vector<16x32xf32>
    %37 = arith.truncf %36 : vector<16x32xf32> to vector<16x32xbf16>
    %38 = arith.extf %37 : vector<16x32xbf16> to vector<16x32xf32>
    %39 = arith.subf %36, %38 : vector<16x32xf32>
    %40 = arith.truncf %39 : vector<16x32xf32> to vector<16x32xbf16>
    %cst_11 = arith.constant dense<0.000000e+00> : vector<32x32xf32>
    %41 = tpu.matmul %33, %34, %cst_11 {dimension_numbers = #tpu.dot_dimension_numbers<[1], [0], [0], [1], [0, 0, 1, 1], [], []>} : vector<32x16xbf16>, vector<16x32xbf16>, vector<32x32xf32> -> vector<32x32xf32>
    %cst_12 = arith.constant dense<0.000000e+00> : vector<32x32xf32>
    %42 = tpu.matmul %33, %37, %cst_12 {dimension_numbers = #tpu.dot_dimension_numbers<[1], [0], [0], [1], [0, 0, 1, 1], [], []>} : vector<32x16xbf16>, vector<16x32xbf16>, vector<32x32xf32> -> vector<32x32xf32>
    %43 = arith.addf %41, %42 : vector<32x32xf32>
    %cst_13 = arith.constant dense<0.000000e+00> : vector<32x32xf32>
    %44 = tpu.matmul %33, %40, %cst_13 {dimension_numbers = #tpu.dot_dimension_numbers<[1], [0], [0], [1], [0, 0, 1, 1], [], []>} : vector<32x16xbf16>, vector<16x32xbf16>, vector<32x32xf32> -> vector<32x32xf32>
    %45 = arith.addf %43, %44 : vector<32x32xf32>
    %46 = tpu.iota {dimensions = array<i32: 0>} : vector<32x32xi32>
    %47 = tpu.iota {dimensions = array<i32: 1>} : vector<32x32xi32>
    %48 = arith.cmpi eq, %46, %47 : vector<32x32xi32>
    %cst_14 = arith.constant 0.000000e+00 : f32
    %49 = vector.broadcast %cst_14 : f32 to vector<32x32xf32>
    %50 = arith.select %48, %45, %49 : vector<32x32xi1>, vector<32x32xf32>
    %51 = vector.shape_cast %50 : vector<32x32xf32> to vector<1x32x32xf32>
    %cst_15 = arith.constant dense<0.000000e+00> : vector<1xf32>
    %52 = vector.multi_reduction <add>, %51, %cst_15 [1, 2] : vector<1x32x32xf32> to vector<1xf32>
    %53 = vector.shape_cast %52 : vector<1xf32> to vector<1x1x1xf32>
    %54 = vector.extract %53[0, 0, 0] : f32 from vector<1x1x1xf32>
    %55 = arith.subf %26, %54 : f32
    %c20_i32 = arith.constant 20 : i32
    %56 = vector.broadcast %c20_i32 : i32 to vector<1x16xi32>
    %57 = arith.cmpi ne, %2, %56 : vector<1x16xi32>
    %cst_16 = arith.constant 1.000000e+00 : f32
    %cst_17 = arith.constant 0.000000e+00 : f32
    %58 = vector.broadcast %cst_16 : f32 to vector<1x16xf32>
    %59 = vector.broadcast %cst_17 : f32 to vector<1x16xf32>
    %60 = arith.select %57, %58, %59 : vector<1x16xi1>, vector<1x16xf32>
    %61 = vector.shape_cast %60 : vector<1x16xf32> to vector<1x1x16xf32>
    %cst_18 = arith.constant dense<0.000000e+00> : vector<1xf32>
    %62 = vector.multi_reduction <add>, %61, %cst_18 [1, 2] : vector<1x1x16xf32> to vector<1xf32>
    %63 = vector.shape_cast %62 : vector<1xf32> to vector<1x1x1xf32>
    %64 = vector.extract %63[0, 0, 0] : f32 from vector<1x1x1xf32>
    %65 = tpu.iota {dimensions = array<i32: 1>} : vector<1x8x128xi32>
    %c0_i32 = arith.constant 0 : i32
    %66 = vector.broadcast %c0_i32 : i32 to vector<1x8x128xi32>
    %67 = arith.cmpi eq, %65, %66 : vector<1x8x128xi32>
    %68 = vector.broadcast %55 : f32 to vector<1x8x128xf32>
    %69 = vector.broadcast %64 : f32 to vector<1x8x128xf32>
    %70 = arith.select %67, %68, %69 : vector<1x8x128xi1>, vector<1x8x128xf32>
    %c0_19 = arith.constant 0 : index
    %c0_20 = arith.constant 0 : index
    %c0_21 = arith.constant 0 : index
    %71 = vector.load %arg3[%c0_19, %c0_20, %c0_21] : memref<1x8x128xf32, #tpu.memory_space<vmem>>, vector<1x8x128xf32>
    tpu.vector_store %arg3[%c0_19, %c0_20, %c0_21], %70 {strides = array<i32>} : memref<1x8x128xf32, #tpu.memory_space<vmem>>, vector<1x8x128xf32>,
    return
  }
  func.func @transform_0(%arg0: i32) -> (i32, i32) {
    %c0_i32 = arith.constant 0 : i32
    %c0_i32_0 = arith.constant 0 : i32
    return %arg0, %c0_i32 : i32, i32
  }
  func.func @transform_1(%arg0: i32) -> (i32, i32, i32) {
    %c0_i32 = arith.constant 0 : i32
    %c0_i32_0 = arith.constant 0 : i32
    %c0_i32_1 = arith.constant 0 : i32
    return %arg0, %c0_i32, %c0_i32_0 : i32, i32, i32
  }
  func.func @transform_2(%arg0: i32) -> (i32, i32, i32) {
    %c0_i32 = arith.constant 0 : i32
    %c0_i32_0 = arith.constant 0 : i32
    %c0_i32_1 = arith.constant 0 : i32
    return %arg0, %c0_i32, %c0_i32_0 : i32, i32, i32
  }
}

</mosaic_0001>

<bundles_post_ra>
// kernel: tpu_custom_call.1
= control target key start
LH: loop header
LB: loop body
LE: loop exit
PB: predicated region body
PF: predicated region fallthrough
CT: control target
= control target key end

     0   :  { %7 = vsyncpa [#allocation3], 0  ;;  %s524_s0 = inlined_call_operand.hbm [shape: f32[16,32], index: 0, kind: input, shape index: {}]   ;;  %s525_s1 = inlined_call_operand.vmem [shape: s32[1,1,16], index: 1, kind: input, shape index: {}]   ;;  %s526_s2 = inlined_call_operand.hbm [shape: f32[1,8,128], index: 2, kind: output, shape index: {}]  }
   0x1   :  { %8 = vsyncpa [#allocation4], 0  ;;  %s436_s9 = smov [#allocation2]   ;;  %s388_s13 = scalar_lea.hbm %s524_s0, 256 }
   0x2   :  { %s14_s10 = sshll.u32 %s436_s9, 4  ;;  %p389_p0 = scmp.ne.s32.totalorder %s524_s0, %s388_s13  ;;  %s15_s10 = int_to_ptr.vmem [resolvable:$true] %s14_s10 }
   0x3   :  { %p392_p1 = scmp.lt.u32.totalorder %s388_s13, %s524_s0 }
   0x5   :  { %p394_p2 = pnand %p392_p1, %p389_p0 }
   0x7   :  { %397 = shalt.err (!%p394_p2)
}
   0x8   :  { %s398_s18 = scalar_lea.vmem %s15_s10, 256  ;;  %p403_p4 = scmp.lt.s32.totalorder %s15_s10, %s15_s10 }
   0x9   :  { %p399_p3 = scmp.ne.s32.totalorder %s15_s10, %s398_s18  ;;  %p404_p5 = scmp.lt.s32.totalorder %s398_s18, %s398_s18 }
   0xb   :  { %p405_p6 = por %p404_p5, %p403_p4 }
   0xd   :  { %p406_p7 = pnand %p405_p6, %p399_p3 }
   0xf   :  { %409 = shalt.err (!%p406_p7)
}
  0x10   :  { %s437_s19 = smov 128   ;;  %s438_s20 = smov 8  }
  0x11   :  { %20 = dma.hbm_to_vmem [thread:$0]  %s524_s0, 256, %s15_s10, [#allocation3], %s437_s19, %s437_s19, %s438_s20  }
  0x12   :  { %432 = dma.done.wait [#allocation3], 256  }
  0x13   :  { %433 = vsyncadd [#allocation3], 4294967040  ;;  %vm45_vm0 = vcmask 261120   ;;  %v27_v0 = vld [vmem:[#allocation2] sm:$0xff]  ;;  %v28_v1 = vld [vmem:[#allocation2 + $0x8] sm:$0xff]  ;;  %v31_v4 = vlaneseq  ;;  %v439_v10 = vmov 0.0  }
  0x14   :  { %v46_v2 = vsel %vm45_vm0, %v27_v0, -inf  ;;  %v49_v3 = vsel %vm45_vm0, %v28_v1, -inf  ;;  %v477_v7 = vld [vmem:[%s525_s1] sm:$0x1]  ;;  %vm110_vm3 = vcmask 130048   ;;  %vm70_vm6 = vcmask 7168  }
  0x15   :  { %47 = vmax.xlane.f32.xlu0 %v46_v2  ;;  %v471_v5 = vshrl.u32 %v31_v4, 7  ;;  %vm295_vm7 = vcmp.ne.s32.totalorder %v477_v7, 20  ;;  %vm297_vm8 = vcmask 122880   ;;  %v269_v54 = vand.u32 127, %v31_v4  ;;  %s440_s25 = smov [#allocation5]  }
  0x16   :  { %v296_v49 = vsel %vm295_vm7, 1.0, %v439_v10  ;;  %s319_s26 = sshll.u32 %s440_s25, 4  ;;  %s320_s26 = int_to_ptr.vmem [resolvable:$true] %s319_s26 }
  0x17   :  { %v87_v6 = vsub.s32 0, %v471_v5  ;;  %v480_v8 = vadd.s32 8, %v471_v5  ;;  %v488_v14 = vadd.s32 16, %v471_v5  ;;  %v491_v15 = vadd.s32 24, %v471_v5  ;;  %s410_s29 = scalar_lea.vmem %s320_s26, 128  ;;  %p415_p9 = scmp.lt.s32.totalorder %s320_s26, %s320_s26 }
  0x18   :  { %v298_v50 = vsel %vm297_vm8, %v296_v49, 0.0  ;;  %vm270_vm9 = vcmp.eq.s32.totalorder %v471_v5, %v269_v54  ;;  %vm308_vm13 = vcmp.eq.s32.totalorder %v471_v5, 0  ;;  %p411_p8 = scmp.ne.s32.totalorder %s320_s26, %s410_s29  ;;  %p416_p10 = scmp.lt.s32.totalorder %s410_s29, %s410_s29 }
  0x19   :  { %50 = vmax.xlane.f32.xlu0 %v49_v3  ;;  %v88_v9 = vrot.slane %v477_v7, %v87_v6  ;;  %vm272_vm10 = vcmp.eq.s32.totalorder %v488_v14, %v269_v54  ;;  %vm271_vm11 = vcmp.eq.s32.totalorder %v480_v8, %v269_v54  ;;  %vm273_vm12 = vcmp.eq.s32.totalorder %v491_v15, %v269_v54 }
  0x1a   :  { %p417_p11 = por %p416_p10, %p415_p9 }
  0x1b   :  { %vm89_vm1 = vcmp.eq.s32.totalorder %v471_v5, %v88_v9  ;;  %vm90_vm2 = vcmp.eq.s32.totalorder %v480_v8, %v88_v9  ;;  %vm91_vm4 = vcmp.eq.s32.totalorder %v488_v14, %v88_v9  ;;  %vm92_vm5 = vcmp.eq.s32.totalorder %v491_v15, %v88_v9 }
  0x1c   :  { %v93_v11 = vsel %vm89_vm1, 1.0, %v439_v10  ;;  %v94_v12 = vsel %vm90_vm2, 1.0, %v439_v10  ;;  %v95_v21 = vsel %vm91_vm4, 1.0, %v439_v10  ;;  %v96_v22 = vsel %vm92_vm5, 1.0, %v439_v10  ;;  %p418_p12 = pnand %p417_p11, %p411_p8 }
  0x1d   :  { %v97_v13 = vpack.c.bf16 %v94_v12, %v93_v11  ;;  %v98_v27 = vpack.c.bf16 %v96_v22, %v95_v21 }
  0x1f   :  { %351 = vmatprep.mubr.msk.bf16.mxu0 %vm110_vm3, %v97_v13  ;;  %345 = vmatprep.mubr.msk.bf16.mxu1 %vm110_vm3, %v97_v13 }
  0xa2   :  { %v48_v16 = vpop.xlane.xlu0 %47 }
  0xa3   :  { %v52_v17 = vsub.f32 %v27_v0, %v48_v16 }
  0xa5   :  { %v54_v18 = vmul.f32 1.442695, %v52_v17 }
  0xa6   :  { %v51_v19 = vpop.xlane.xlu0 %50 }
  0xa7   :  { %380 = vpow2.f32 %v54_v18  ;;  %v53_v20 = vsub.f32 %v28_v1, %v51_v19 }
  0xa9   :  { %v56_v23 = vmul.f32 1.442695, %v53_v20  ;;  %v99_v24 = vpack.c.bf16 %v53_v20, %v52_v17 }
  0xab   :  { %382 = vpow2.f32 %v56_v23  ;;  %v100_v25 = vunpack.c.l.bf16 %v99_v24  ;;  %v101_v26 = vunpack.c.h.bf16 %v99_v24  ;;  %349 = vmatprep.subr.bf16.mxu0 %v99_v24 }
  0xac   :  { %350 = vmatpush3.bf16.msra.mxu0 %v99_v24 }
  0xad   :  { %v102_v28 = vsub.f32 %v52_v17, %v100_v25  ;;  %v103_v29 = vsub.f32 %v53_v20, %v101_v26 }
  0xaf   :  { %v104_v30 = vpack.c.bf16 %v103_v29, %v102_v28  ;;  %352 = vmatmul.mubr.msk.bf16.vlgmr.msra.gmra.mrb[0].mxu0 %vm110_vm3, %v98_v27 }
  0xb0   :  { %357 = vmatprep.mubr.msk.bf16.mxu0 %vm110_vm3, %v97_v13 }
  0xb1   :  { %v381_v31 = vpop.eup %380  ;;  %343 = vmatprep.subr.bf16.mxu1 %v104_v30  ;;  %v105_v32 = vunpack.c.l.bf16 %v104_v30  ;;  %v106_v33 = vunpack.c.h.bf16 %v104_v30 }
  0xb2   :  { %344 = vmatpush3.bf16.msra.mxu1 %v104_v30  ;;  %v58_v34 = vsel %vm45_vm0, %v381_v31, 0.0 }
  0xb3   :  { %59 = vadd.xlane.f32.xlu1 %v58_v34  ;;  %v107_v35 = vsub.f32 %v102_v28, %v105_v32  ;;  %v108_v36 = vsub.f32 %v103_v29, %v106_v33 }
  0xb5   :  { %v383_v37 = vpop.eup %382  ;;  %v109_v38 = vpack.c.bf16 %v108_v36, %v107_v35  ;;  %346 = vmatmul.mubr.msk.bf16.vlgmr.msra.gmra.mrb[0].mxu1 %vm110_vm3, %v98_v27 }
  0xb6   :  { %v61_v39 = vsel %vm45_vm0, %v383_v37, 0.0 }
  0xb7   :  { %355 = vmatprep.subr.bf16.mxu0 %v109_v38  ;;  %62 = vadd.xlane.f32.xlu1 %v61_v39 }
  0xb8   :  { %356 = vmatpush3.bf16.msra.mxu0 %v109_v38 }
  0xbb   :  { %358 = vmatmul.mubr.msk.bf16.vlgmr.msra.gmra.mrb[0].mxu0 %vm110_vm3, %v98_v27 }
 0x140   :  { %v60_v40 = vpop.xlane.xlu1 %59 }
 0x141   :  { %384 = vlog2.f32 %v60_v40 }
 0x144   :  { %v63_v41 = vpop.xlane.xlu1 %62 }
 0x145   :  { %386 = vlog2.f32 %v63_v41 }
 0x14b   :  { %v385_v42 = vpop.eup %384 }
 0x14c   :  { %v65_v43 = vmul.f32 0.6931472, %v385_v42 }
 0x14e   :  { %v71_v46 = vsel %vm70_vm6, %v65_v43, 0.0 }
 0x14f   :  { %v387_v44 = vpop.eup %386 }
 0x150   :  { %v67_v45 = vmul.f32 0.6931472, %v387_v44 }
 0x152   :  { %v72_v47 = vsel %vm70_vm6, %v67_v45, 0.0 }
 0x153   :  { %v73_v48 = vadd.f32 %v72_v47, %v71_v46 }
 0x155   :  { %74 = vadd.xlane.f32.xlu0 %v73_v48 }
 0x159   :  { %299 = vadd.xlane.f32.xlu0 %v298_v50 }
 0x188   :  { %v347_v51 = vpop.f32.mrb[0].mxu1 }
 0x189   :  { %v151_v52 = vpop.f32.mrb[1].mxu1 }
 0x18a   :  { %v348_v53 = vpop.f32.mrb[2].mxu1 }
 0x18b   :  { %v154_v55 = vpop.f32.mrb[3].mxu1 }
 0x18e   :  { %v359_v56 = vpop.f32.mrb[0].mxu0 }
 0x18f   :  { %v361_v57 = vadd.f32 %v359_v56, %v347_v51  ;;  %v249_v58 = vpop.f32.mrb[1].mxu0 }
 0x190   :  { %v362_v59 = vadd.f32 %v249_v58, %v151_v52  ;;  %v360_v60 = vpop.f32.mrb[2].mxu0 }
 0x191   :  { %v363_v61 = vadd.f32 %v360_v60, %v348_v53  ;;  %v252_v62 = vpop.f32.mrb[3].mxu0  ;;  %v276_v1 = vsel %vm272_vm10, %v361_v57, 0.0 }
 0x192   :  { %v274_v63 = vsel %vm270_vm9, %v362_v59, 0.0  ;;  %v364_v0 = vadd.f32 %v252_v62, %v154_v55  ;;  %v281_v9 = vsel %vm45_vm0, %v276_v1, 0.0 }
 0x193   :  { %v278_v3 = vsel %vm45_vm0, %v274_v63, 0.0  ;;  %v277_v6 = vsel %vm273_vm12, %v363_v61, 0.0 }
 0x194   :  { %v275_v2 = vsel %vm271_vm11, %v364_v0, 0.0  ;;  %v283_v11 = vsel %vm45_vm0, %v277_v6, 0.0 }
 0x195   :  { %v279_v4 = vsel %vm45_vm0, %v275_v2, 0.0 }
 0x196   :  { %v280_v7 = vadd.f32 %v279_v4, %v278_v3 }
 0x198   :  { %v282_v10 = vadd.f32 %v281_v9, %v280_v7 }
 0x19a   :  { %v284_v12 = vadd.f32 %v283_v11, %v282_v10 }
 0x19c   :  { %285 = vadd.xlane.f32.xlu1 %v284_v12 }
 0x1e2   :  { %v75_v8 = vpop.xlane.xlu0 %74 }
 0x1e3   :  { %v76_v13 = vrot.slane %v75_v8, 4 }
 0x1e5   :  { %v77_v14 = vadd.f32 %v76_v13, %v75_v8 }
 0x1e6   :  { %v300_v19 = vpop.xlane.xlu0 %299 }
 0x1e7   :  { %v78_v16 = vrot.slane %v77_v14, 2  ;;  %v301_v20 = vrot.slane %v300_v19, 4 }
 0x1e9   :  { %v79_v15 = vadd.f32 %v78_v16, %v77_v14  ;;  %v302_v21 = vadd.f32 %v301_v20, %v300_v19 }
 0x1eb   :  { %v80_v17 = vrot.slane %v79_v15, 1  ;;  %v303_v23 = vrot.slane %v302_v21, 2 }
 0x1ed   :  { %v81_v18 = vadd.f32 %v80_v17, %v79_v15  ;;  %v304_v26 = vadd.f32 %v303_v23, %v302_v21 }
 0x1ef   :  { %369 = vpush %v81_v18  ;;  %v305_v29 = vrot.slane %v304_v26, 1 }
 0x1f1   :  { %v306_v32 = vadd.f32 %v305_v29, %v304_v26 }
 0x220   :  { %s370_s0 = spop %369 }
 0x229   :  { %v286_v22 = vpop.xlane.xlu1 %285 }
 0x22a   :  { %v287_v24 = vrot.slane %v286_v22, 4 }
 0x22c   :  { %v288_v25 = vadd.f32 %v287_v24, %v286_v22 }
 0x22e   :  { %v289_v27 = vrot.slane %v288_v25, 2 }
 0x230   :  { %v290_v28 = vadd.f32 %v289_v27, %v288_v25 }
 0x232   :  { %v291_v30 = vrot.slane %v290_v28, 1 }
 0x234   :  { %v292_v31 = vadd.f32 %v291_v30, %v290_v28 }
 0x236   :  { %371 = vpush %v292_v31 }
 0x237   :  { %373 = vpush %v306_v32 }
 0x267   :  { %s372_s1 = spop %371 }
 0x268   :  { %s294_s27 = ssub.f32 %s370_s0, %s372_s1  ;;  %s374_s28 = spop %373 }
 0x269   :  { %v310_v34 = vstv %s374_s28 }
 0x26a   :  { %v309_v33 = vstv %s294_s27 }
 0x26b   :  { %v311_v35 = vsel %vm308_vm13, %v309_v33, %v310_v34 }
 0x26c   :  { %312 = vst [vmem:[#allocation5] sm:$0xff] %v311_v35 }
 0x26d   :  { %421 = shalt.err (!%p418_p12)
}
 0x26e   :  { %s422_s4 = scalar_lea.hbm %s526_s2, 128 }
 0x26f   :  { %p423_p13 = scmp.ne.s32.totalorder %s526_s2, %s422_s4  ;;  %p426_p0 = scmp.lt.u32.totalorder %s422_s4, %s526_s2 }
 0x271   :  { %p428_p1 = pnand %p426_p0, %p423_p13 }
 0x273   :  { %431 = shalt.err (!%p428_p1)
}
 0x274   :  { %322 = dma.vmem_to_hbm [thread:$0]  %s320_s26, 128, %s526_s2, [#allocation4]  }
 0x275   :  { %434 = dma.done.wait [#allocation4], 128  }
 0x276   :  { %435 = vsyncadd [#allocation4], 4294967168 }
 0x277   :  { %326 = vsyncpa [#allocation3], 1 }
 0x278   :  { %327 = vsyncpa [#allocation4], 1 }

</bundles_post_ra>
